<compile_context>
chip_gen: v6e
topology: v6e:2x2x1
jax: 0.10.0
libtpu: 0.0.40
codegen_flags: <defaults>
</compile_context>

<pallas_src>
import math

import jax
import jax.numpy as jnp
from jax import lax
from jax.experimental import pallas as pl
from jax.experimental.pallas import tpu as pltpu


def _self_attention_kernel(h_ref, w_ref, b_ref, o_ref):
    # h_ref: (N, d)   -- batch dim squeezed by the BlockSpec
    # w_ref: (d, 3d)  -- fused [Wq^T * scale | Wk^T | Wv^T]
    # b_ref: (1, 3d)  -- fused [bq * scale | bk | bv]
    h = h_ref[...]
    w = w_ref[...]
    b = b_ref[...]

    d = h.shape[-1]

    # Single fused projection on the MXU; f32 accumulation, no operand upcast.
    qkv = jnp.dot(h, w, preferred_element_type=jnp.float32) + b.astype(jnp.float32)
    q = qkv[:, :d]          # already carries the 1/sqrt(d) scale (folded in wrapper)
    k = qkv[:, d:2 * d]
    v = qkv[:, 2 * d:]

    # scores = Q @ K^T without an explicit XLU transpose of K: contract on the
    # shared feature axis directly.
    scores = lax.dot_general(
        q, k,
        dimension_numbers=(((1,), (1,)), ((), ())),
        preferred_element_type=jnp.float32)                       # (N, N)

    # Numerically-stable softmax; the per-row divide goes to the EUP via reciprocal.
    m = jnp.max(scores, axis=-1, keepdims=True)
    e = jnp.exp(scores - m)
    denom = jnp.sum(e, axis=-1, keepdims=True)
    attn = e * pl.reciprocal(denom, approx=False)

    out = jnp.dot(attn, v, preferred_element_type=jnp.float32)    # (N, d)
    o_ref[...] = out.astype(o_ref.dtype)


def self_attention(H, Wq, bq, Wk, bk, Wv, bv):
    """H: (bs, N, d_model). Wq/Wk/Wv: (d_model, d_model) in PyTorch (out, in)
    convention. bq/bk/bv: (d_model,). Returns (bs, N, d_model)."""
    bs, N, d = H.shape
    scale = 1.0 / math.sqrt(float(d))

    # nn.Linear computes x @ W.T + b. Pre-transpose, fuse Q|K|V into one (d, 3d)
    # weight, and fold the softmax scale into the Q projection so the kernel never
    # multiplies the (N, N) score tensor by a scalar.
    w_qkv = jnp.concatenate(
        [jnp.transpose(Wq) * scale, jnp.transpose(Wk), jnp.transpose(Wv)], axis=1)
    b_qkv = jnp.concatenate([bq * scale, bk, bv]).reshape(1, 3 * d)
    # Keep operands in the model dtype (bf16 in production runs); matmuls
    # accumulate in f32 inside the kernel.
    w_qkv = w_qkv.astype(H.dtype)
    b_qkv = b_qkv.astype(H.dtype)

    grid = (bs,)
    h_spec = pl.BlockSpec((None, N, d), lambda b: (b, 0, 0))   # batch dim squeezed
    w_spec = pl.BlockSpec((d, 3 * d), lambda b: (0, 0))
    b_spec = pl.BlockSpec((1, 3 * d), lambda b: (0, 0))
    o_spec = pl.BlockSpec((None, N, d), lambda b: (b, 0, 0))

    return pl.pallas_call(
        _self_attention_kernel,
        out_shape=jax.ShapeDtypeStruct((bs, N, d), H.dtype),
        grid_spec=pltpu.PrefetchScalarGridSpec(
            num_scalar_prefetch=0,
            grid=grid,
            in_specs=[h_spec, w_spec, b_spec],
            out_specs=o_spec,
        ),
        compiler_params=pltpu.CompilerParams(
            dimension_semantics=("parallel",)),
    )(H, w_qkv, b_qkv)


def _reference(H, Wq, bq, Wk, bk, Wv, bv):
    # Pure-JAX reference mirroring the PyTorch forward exactly.
    Q = jnp.einsum("bnd,od->bno", H, Wq) + bq
    K = jnp.einsum("bnd,od->bno", H, Wk) + bk
    V = jnp.einsum("bnd,od->bno", H, Wv) + bv
    d_model = H.shape[-1]
    scores = jnp.einsum("bnd,bmd->bnm", Q, K) / jnp.sqrt(
        jnp.asarray(d_model, dtype=jnp.float32))
    attn = jax.nn.softmax(scores, axis=-1)
    return jnp.einsum("bnm,bmd->bnd", attn, V)


if __name__ == "__main__":
    bs, N, d_model = 2, 8, 32

    key = jax.random.PRNGKey(0)
    k_h, k_wq, k_bq, k_wk, k_bk, k_wv, k_bv = jax.random.split(key, 7)

    H = jax.random.normal(k_h, (bs, N, d_model), dtype=jnp.float32)

    # nn.Linear(d_model, d_model) default init: U(-1/sqrt(d), 1/sqrt(d))
    bound = 1.0 / math.sqrt(d_model)
    Wq = jax.random.uniform(k_wq, (d_model, d_model), jnp.float32, -bound, bound)
    bq = jax.random.uniform(k_bq, (d_model,), jnp.float32, -bound, bound)
    Wk = jax.random.uniform(k_wk, (d_model, d_model), jnp.float32, -bound, bound)
    bk = jax.random.uniform(k_bk, (d_model,), jnp.float32, -bound, bound)
    Wv = jax.random.uniform(k_wv, (d_model, d_model), jnp.float32, -bound, bound)
    bv = jax.random.uniform(k_bv, (d_model,), jnp.float32, -bound, bound)

    out = self_attention(H, Wq, bq, Wk, bk, Wv, bv)
    out = jax.block_until_ready(out)

    ref = _reference(H, Wq, bq, Wk, bk, Wv, bv)
    assert out.shape == (bs, N, d_model)
    assert jnp.allclose(out, ref, atol=1e-4, rtol=1e-4), (
        f"max abs err = {jnp.max(jnp.abs(out - ref))}")

    print("KERNEL_OK")
</pallas_src>

<mosaic_0001>
module attributes {stable_mosaic.version = 11 : i64} {
  func.func @_self_attention_kernel(%arg0: i32, %arg1: memref<1x8x32xf32, #tpu.memory_space<vmem>>, %arg2: memref<32x96xf32, #tpu.memory_space<vmem>>, %arg3: memref<1x96xf32, #tpu.memory_space<vmem>>, %arg4: memref<1x8x32xf32, #tpu.memory_space<vmem>>) attributes {dimension_semantics = [#tpu.dimension_semantics<parallel>], iteration_bounds = array<i64: 2>, scalar_prefetch = 0 : i64, scratch_operands = 0 : i64, tpu.core_type = #tpu.core_type<tc>, window_params = [{transform_indices = @transform_0, window_bounds = array<i64: 1, 8, 32>}, {pipeline_mode = #tpu.pipeline_mode<synchronous>, transform_indices = @transform_1, window_bounds = array<i64: 32, 96>}, {pipeline_mode = #tpu.pipeline_mode<synchronous>, transform_indices = @transform_2, window_bounds = array<i64: 1, 96>}, {transform_indices = @transform_3, window_bounds = array<i64: 1, 8, 32>}]} {
    %c0 = arith.constant 0 : index
    %c0_0 = arith.constant 0 : index
    %c0_1 = arith.constant 0 : index
    %0 = vector.load %arg1[%c0, %c0_0, %c0_1] : memref<1x8x32xf32, #tpu.memory_space<vmem>>, vector<1x8x32xf32>
    %1 = vector.shape_cast %0 : vector<1x8x32xf32> to vector<8x32xf32>
    %c0_2 = arith.constant 0 : index
    %c0_3 = arith.constant 0 : index
    %2 = vector.load %arg2[%c0_2, %c0_3] : memref<32x96xf32, #tpu.memory_space<vmem>>, vector<32x96xf32>
    %c0_4 = arith.constant 0 : index
    %c0_5 = arith.constant 0 : index
    %3 = vector.load %arg3[%c0_4, %c0_5] : memref<1x96xf32, #tpu.memory_space<vmem>>, vector<1x96xf32>
    %cst = arith.constant dense<0.000000e+00> : vector<8x96xf32>
    %4 = tpu.matmul %1, %2, %cst {dimension_numbers = #tpu.dot_dimension_numbers<[1], [0], [0], [1], [0, 0, 1, 1], [], []>} : vector<8x32xf32>, vector<32x96xf32>, vector<8x96xf32> -> vector<8x96xf32>
    %5 = vector.broadcast %3 : vector<1x96xf32> to vector<8x96xf32>
    %6 = arith.addf %4, %5 : vector<8x96xf32>
    %7 = vector.extract_strided_slice %6 {offsets = [0, 0], sizes = [8, 32], strides = [1, 1]} : vector<8x96xf32> to vector<8x32xf32>
    %8 = vector.extract_strided_slice %6 {offsets = [0, 32], sizes = [8, 32], strides = [1, 1]} : vector<8x96xf32> to vector<8x32xf32>
    %9 = vector.extract_strided_slice %6 {offsets = [0, 64], sizes = [8, 32], strides = [1, 1]} : vector<8x96xf32> to vector<8x32xf32>
    %cst_6 = arith.constant dense<0.000000e+00> : vector<8x8xf32>
    %10 = tpu.matmul %7, %8, %cst_6 {dimension_numbers = #tpu.dot_dimension_numbers<[1], [1], [0], [0], [0, 0, 1, 0], [], []>} : vector<8x32xf32>, vector<8x32xf32>, vector<8x8xf32> -> vector<8x8xf32>
    %cst_7 = arith.constant dense<0xFF800000> : vector<8xf32>
    %11 = vector.multi_reduction <maximumf>, %10, %cst_7 [1] : vector<8x8xf32> to vector<8xf32>
    %12 = vector.shape_cast %11 : vector<8xf32> to vector<8x1xf32>
    %13 = vector.broadcast %12 : vector<8x1xf32> to vector<8x8xf32>
    %14 = arith.subf %10, %13 : vector<8x8xf32>
    %15 = math.exp %14 : vector<8x8xf32>
    %cst_8 = arith.constant dense<0.000000e+00> : vector<8xf32>
    %16 = vector.multi_reduction <add>, %15, %cst_8 [1] : vector<8x8xf32> to vector<8xf32>
    %17 = vector.shape_cast %16 : vector<8xf32> to vector<8x1xf32>
    %18 = tpu.reciprocal %17 : vector<8x1xf32> -> vector<8x1xf32>
    %19 = vector.broadcast %18 : vector<8x1xf32> to vector<8x8xf32>
    %20 = arith.mulf %15, %19 : vector<8x8xf32>
    %cst_9 = arith.constant dense<0.000000e+00> : vector<8x32xf32>
    %21 = tpu.matmul %20, %9, %cst_9 {dimension_numbers = #tpu.dot_dimension_numbers<[1], [0], [0], [1], [0, 0, 1, 1], [], []>} : vector<8x8xf32>, vector<8x32xf32>, vector<8x32xf32> -> vector<8x32xf32>
    %c0_10 = arith.constant 0 : index
    %c0_11 = arith.constant 0 : index
    %c0_12 = arith.constant 0 : index
    %22 = vector.load %arg4[%c0_10, %c0_11, %c0_12] : memref<1x8x32xf32, #tpu.memory_space<vmem>>, vector<1x8x32xf32>
    %23 = vector.shape_cast %22 : vector<1x8x32xf32> to vector<8x32xf32>
    %24 = vector.shape_cast %21 : vector<8x32xf32> to vector<1x8x32xf32>
    tpu.vector_store %arg4[%c0_10, %c0_11, %c0_12], %24 {strides = array<i32>} : memref<1x8x32xf32, #tpu.memory_space<vmem>>, vector<1x8x32xf32>,
    return
  }
  func.func @transform_0(%arg0: i32) -> (i32, i32, i32) {
    %c0_i32 = arith.constant 0 : i32
    %c0_i32_0 = arith.constant 0 : i32
    %c0_i32_1 = arith.constant 0 : i32
    return %arg0, %c0_i32, %c0_i32_0 : i32, i32, i32
  }
  func.func @transform_1(%arg0: i32) -> (i32, i32) {
    %c0_i32 = arith.constant 0 : i32
    %c0_i32_0 = arith.constant 0 : i32
    %c0_i32_1 = arith.constant 0 : i32
    return %c0_i32, %c0_i32_0 : i32, i32
  }
  func.func @transform_2(%arg0: i32) -> (i32, i32) {
    %c0_i32 = arith.constant 0 : i32
    %c0_i32_0 = arith.constant 0 : i32
    %c0_i32_1 = arith.constant 0 : i32
    return %c0_i32, %c0_i32_0 : i32, i32
  }
  func.func @transform_3(%arg0: i32) -> (i32, i32, i32) {
    %c0_i32 = arith.constant 0 : i32
    %c0_i32_0 = arith.constant 0 : i32
    %c0_i32_1 = arith.constant 0 : i32
    return %arg0, %c0_i32, %c0_i32_0 : i32, i32, i32
  }
}

</mosaic_0001>

<bundles_post_ra>
// kernel: tpu_custom_call.1
= control target key start
LH: loop header
LB: loop body
LE: loop exit
PB: predicated region body
PF: predicated region fallthrough
CT: control target
= control target key end

     0   :  { %8 = vsyncpa [#allocation3], 0  ;;  %s999_s0 = inlined_call_operand.hbm [shape: f32[2,8,32], index: 0, kind: input, shape index: {}]   ;;  %s1000_s1 = inlined_call_operand.hbm [shape: f32[32,96], index: 1, kind: input, shape index: {}]   ;;  %s1001_s2 = inlined_call_operand.vmem [shape: f32[1,96], index: 2, kind: input, shape index: {}]   ;;  %s1002_s3 = inlined_call_operand.hbm [shape: f32[2,8,32], index: 3, kind: output, shape index: {}]  }
   0x1   :  { %10 = vsyncpa [#allocation3 + $0x1], 0 }
   0x2   :  { %11 = vsyncpa [#allocation6], 0 }
   0x3   :  { %12 = vsyncpa [#allocation4], 0 }
   0x4   :  { %14 = vsyncpa [#allocation4 + $0x1], 0  ;;  %s816_s12 = smov 0   ;;  %s818_s13 = smov 0  }
   0x5   :  { %s820_s14 = smov 0   ;;  %s822_s15 = smov 0  }
   0x6 LB: > { %s837_s16 = sadd.s32 4294967295, %s785_s15   ;;  %s547_s17 = sadd.s32 4294967294, %s785_s15   ;;  %s785_s15 = sphi %s822_s15, %s1024_s15   ;;  %s781_s14 = sphi %s820_s14, %s1023_s14   ;;  %s777_s13 = sphi %s818_s13, %s1022_s13   ;;  %s773_s12 = sphi %s816_s12, %s1021_s12  }
   0x7   : > { %p40_p0 = scmp.ne.s32.totalorder %s777_s13, %s773_s12  ;;  %p1003_p1 = scmp.eq.s32.totalorder %s837_s16, 0 }
   0x8   : > { %p112_p3 = scmp.eq.s32.totalorder %s547_s17, 1  ;;  %p548_p5 = scmp.ge.s32.totalorder %s785_s15, 1 }
   0x9   : > { %p846_p4 = por %p1003_p1, %p40_p0  ;;  %p119_p7 = scmp.lt.s32.totalorder %s785_s15, 3 }
   0xa   : > { %p851_p6 = por %p112_p3, %p40_p0  ;;  %s787_s21 = smov [#allocation5]  }
   0xb   : > { %s1007_s18 = scalar_select %p846_p4, 1, 0 }
   0xc   : > { %s1008_s19 = scalar_select %p851_p6, 1, 0 }
   0xd   : > { %p856_p8 = pnand %p548_p5, %p119_p7  ;;  %s131_s22 = sshll.u32 %s787_s21, 4  ;;  %s132_s22 = int_to_ptr.vmem [resolvable:$true] %s131_s22 }
   0xe   : > { %s870_s24 = sadd.s32 1, %s785_s15   ;;  %s27_s25 = sadd.s32 1, %s781_s14 }
   0xf   : > { %s1009_s20 = scalar_select %p856_p8, 1, 0 }
  0x10   : > { %p604_p9 = pneg %p856_p8  ;;  %s24_s26 = ssub.s32 %s785_s15, %s870_s24 }
  0x11   : > { %s674_s27 = scalar_lea.vmem %s132_s22, 512  ;;  %p682_p5 = scmp.lt.s32.totalorder %s132_s22, %s132_s22 }
  0x12   : > { %p865_p11 = pnand %p604_p9, %p1003_p1  ;;  %p675_p13 = scmp.ne.s32.totalorder %s132_s22, %s674_s27 }
  0x13   : > { %p683_p7 = scmp.lt.s32.totalorder %s674_s27, %s674_s27 }
  0x14   : > { %p665_p12 = pneg %p865_p11 }
  0x15   : > { %p684_p10 = por %p683_p7, %p682_p5 }
  0x16   : > { %p677_p0 = pnand %p675_p13, %p665_p12 }
  0x18   : > { %p678_p3 = pneg %p677_p0 }
  0x1a   : > { %p685_p2 = pnand %p684_p10, %p678_p3 }
  0x1c   : > { %688 = shalt.err (!%p685_p2)
}
  0x1d   : > { %s788_s28 = smov 128   ;;  %s789_s29 = smov 8  }
  0x1e   : > { %607 = dma.hbm_to_vmem [thread:$0]  (!%p865_p11), %s1000_s1, 512, %s132_s22, [#allocation6], %s788_s28, %s788_s28, %s789_s29  }
  0x1f   : > { %p25_p9 = scmp.eq.s32.totalorder %s24_s26, 0  ;;  %p34_p12 = scmp.ne.s32.totalorder %s781_s14, %s777_s13 }
  0x20   : > { %p35_p10 = scmp.eq.s32.totalorder %s785_s15, 0  ;;  %p617_p2 = scmp.lt.s32.totalorder %s785_s15, 2 }
  0x21   : > { %s887_s5 = scalar_select %p25_p9, %s781_s14, %s27_s25  }
  0x22   : > { %p36_p13 = por %p35_p10, %p34_p12  ;;  %p1011_p0 = scmp.eq.s32.totalorder %s837_s16, 1 }
  0x23   : > { %s148_s7 = sand.u32 1, %s781_s14   ;;  %s552_s8 = sshll.u32 %s785_s15, 7 }
  0x24   : > { %p891_p3 = por %p1011_p0, %p34_p12  ;;  %s551_s9 = sshll.u32 %s148_s7, 3 }
  0x25   : > { %s900_s17 = scalar_lea.hbm %s999_s0, %s552_s8  ;;  %s152_s21 = scalar_lea.vmem [#allocation2], %s551_s9 }
  0x26   : > { %s1012_s6 = scalar_select %p891_p3, 1, 0 }
  0x27   : > { %s159_s22 = sshll.u32 %s152_s21, 4  ;;  %p902_p11 = pnand %p617_p2, %p36_p13  ;;  %s160_s22 = int_to_ptr.vmem [resolvable:$true] %s159_s22 }
  0x28   : > { %s149_s25 = scalar_lea.sflag [#allocation3], %s148_s7  ;;  %s689_s26 = scalar_lea.hbm %s900_s17, 128 }
  0x29   : > { %p690_p5 = scmp.ne.s32.totalorder %s900_s17, %s689_s26  ;;  %p691_p7 = pneg %p902_p11 }
  0x2a   : > { %s694_s29 = scalar_lea.hbm %s999_s0, 256  ;;  %p695_p10 = scmp.lt.s32.totalorder %s900_s17, %s999_s0 }
  0x2b   : > { %p692_p9 = pnand %p691_p7, %p690_p5  ;;  %p696_p2 = scmp.lt.s32.totalorder %s694_s29, %s689_s26 }
  0x2d   : > { %p693_p12 = pneg %p692_p9  ;;  %p697_p13 = por %p696_p2, %p695_p10 }
  0x2f   : > { %p698_p0 = pnand %p697_p13, %p693_p12 }
  0x31   : > { %701 = shalt.err (!%p698_p0)
}
  0x32   : > { %s702_s8 = scalar_lea.vmem %s160_s22, 128  ;;  %s790_s7 = smov [#allocation2]  }
  0x33   : > { %p703_p1 = scmp.ne.s32.totalorder %s160_s22, %s702_s8  ;;  %s707_s9 = sshll.u32 %s790_s7, 4  ;;  %s708_s9 = int_to_ptr.vmem [resolvable:$false] %s707_s9 }
  0x34   : > { %s709_s10 = scalar_lea.vmem %s708_s9, 256  ;;  %p710_p5 = scmp.lt.s32.totalorder %s160_s22, %s708_s9 }
  0x35   : > { %p705_p6 = pnand %p703_p1, %p691_p7  ;;  %p711_p9 = scmp.lt.s32.totalorder %s709_s10, %s702_s8 }
  0x37   : > { %p706_p3 = pneg %p705_p6  ;;  %p712_p4 = por %p711_p9, %p710_p5 }
  0x39   : > { %p713_p8 = pnand %p712_p4, %p706_p3 }
  0x3b   : > { %716 = shalt.err (!%p713_p8)
}
  0x3c   : > { %611 = dma.hbm_to_vmem [thread:$0]  (!%p902_p11), %s900_s17, 128, %s160_s22, %s149_s25  }
  0x3d   : > { %p1014_p12 = scmp.ne.s32.totalorder %s1009_s20, 0 }
  0x3e   : > { %s923_s11 = sand.u32 (!%p1014_p12), 1, %s777_s13   ;;  %p1015_p1 = scmp.ne.s32.totalorder (!%p1014_p12), %s1007_s18, 0 }
  0x3f   : > { %168 = sbr.rel (%p1014_p12) target bundleno = 1107 (0x453), region = 32  ;;  %s554_s21 = sshll.u32 (!%p1014_p12), %s923_s11, 3 }
  0x40   : > { %s171_s26 = scalar_lea.sflag (!%p1014_p12), [#allocation3], %s923_s11  ;;  %s174_s27 = scalar_lea.vmem (!%p1014_p12), [#allocation2], %s554_s21 }
  0x44   : > { %760 = dma.done.wait (%p1015_p1), %s171_s26, 128  }
  0x45   : > { %762 = vsyncadd (%p1015_p1), %s171_s26, 4294967168  ;;  %p1016_p4 = scmp.eq.s32.totalorder %s837_s16, 0 }
  0x47   : > { %764 = dma.done.wait (%p1016_p4), [#allocation6], 512   ;;  %p1017_p6 = pmov %p1016_p4 }
  0x48   : > { %v791_v0 = vmov 0.0   ;;  %vm792_vm0 = vmmov 0   ;;  %v205_v1 = vld [vmem:[#allocation5 + $0x18] sm:$0xff]  ;;  %v204_v2 = vld [vmem:[#allocation5 + $0x10] sm:$0xff]  ;;  %v203_v3 = vld [vmem:[#allocation5 + $0x8] sm:$0xff]  ;;  %vm213_vm1 = vcmask 261120  }
  0x49   : > { %766 = vsyncadd (%p1017_p6), [#allocation6], 4294966784  ;;  %575 = vmatprep.subr.mxu0 %v791_v0  ;;  %583 = vmatprep.mubr.msk.f32.mxu0 %vm792_vm0, %v791_v0  ;;  %v202_v4 = vld [vmem:[#allocation5] sm:$0xff]  ;;  %v201_v5 = vld [vmem:[%s174_s27] sm:$0xff]  ;;  %s793_s17 = smov 96   ;;  %vm364_vm2 = vcmask 64512  }
  0x4a   : > { %586 = vmatprep.subr.mxu1 %v791_v0  ;;  %588 = vmatprep.mubr.msk.f32.mxu1 %vm792_vm0, %v791_v0  ;;  %v557_v6 = vld [vmem:[%s1001_s2] ss:$0 sm:$0xff]  ;;  %s794_s22 = smov 64   ;;  %s563_s23 = sshll.u32 %s837_s16, 7 }
  0x4b   : > { %576 = vmatpush3.msra.mxu0 %v205_v1  ;;  %s200_s25 = scalar_lea.vmem [#allocation7], %s554_s21  ;;  %s955_s4 = scalar_lea.hbm %s1002_s3, %s563_s23 }
  0x4c   : > { %577 = vmatprep.subr.mxu0 %v791_v0  ;;  %s467_s28 = sshll.u32 %s200_s25, 4  ;;  %s454_s8 = scalar_lea.sflag [#allocation4], %s923_s11  ;;  %s957_s28 = int_to_ptr.vmem [resolvable:$true] %s467_s28 }
  0x4d   : > { %578 = vmatpush3.msra.mxu0 %v204_v2  ;;  %s717_s7 = scalar_lea.vmem %s957_s28, 128  ;;  %p1018_p3 = scmp.ne.s32.totalorder %s1012_s6, 0 }
  0x4e   : > { %579 = vmatprep.subr.mxu0 %v791_v0  ;;  %p718_p8 = scmp.ne.s32.totalorder %s957_s28, %s717_s7  ;;  %s795_s16 = smov [#allocation7]  }
  0x4f   : > { %580 = vmatpush3.msra.mxu0 %v203_v3  ;;  %s721_s9 = sshll.u32 %s795_s16, 4  ;;  %s722_s9 = int_to_ptr.vmem [resolvable:$false] %s721_s9 }
  0x50   : > { %581 = vmatprep.subr.mxu0 %v791_v0  ;;  %p719_p11 = pnand %p718_p8, %p1018_p3  ;;  %s723_s10 = scalar_lea.vmem %s722_s9, 256 }
  0x51   : > { %582 = vmatpush3.msra.mxu0 %v202_v4  ;;  %p724_p10 = scmp.lt.s32.totalorder %s957_s28, %s722_s9  ;;  %p725_p2 = scmp.lt.s32.totalorder %s723_s10, %s717_s7 }
  0x52   : > { %584 = vmatmul.mubr.msk.f32.vlgmr.msra.gmra.mxu0 %vm213_vm1, %v201_v5  ;;  %p720_p7 = pneg %p719_p11 }
  0x53   : > { %p726_p13 = por %p725_p2, %p724_p10 }
  0x55   : > { %p727_p0 = pnand %p726_p13, %p720_p7 }
 0x112   : > { %v283_v7 = vpop.f32.mrf.mxu0 }
 0x113   : > { %v284_v8 = vadd.f32 %v557_v6, %v283_v7 }
 0x114   : > { %v585_v9 = vpop.f32.mrf.mxu0 }
 0x115   : > { %288 = vrot.lane.b32.xlu0 %v284_v8, %s793_s17 }
 0x187   : > { %v289_v10 = vpop.permute.xlu0 %288 }
 0x188   : > { %587 = vmatpush3.xpose.msk.msra.mxu1 %vm213_vm1, %v289_v10 }
 0x189   : > { %591 = vmatprep.subr.mxu1 %v791_v0 }
 0x18b   : > { %589 = vmatmul.mubr.msk.f32.vlgmr.msra.gmra.mxu1 %vm213_vm1, %v284_v8 }
 0x18c   : > { %593 = vmatprep.mubr.msk.f32.mxu1 %vm792_vm0, %v791_v0 }
 0x24b   : > { %v360_v11 = vpop.f32.mrf.mxu1 }
 0x24c   : > { %v365_v12 = vsel %vm364_vm2, %v360_v11, -inf }
 0x24d   : > { %366 = vmax.xlane.f32.xlu0 %v365_v12  ;;  %v590_v13 = vpop.f32.mrf.mxu1 }
 0x2d6   : > { %v367_v14 = vpop.xlane.xlu0 %366 }
 0x2d7   : > { %v368_v15 = vsub.f32 %v360_v11, %v367_v14 }
 0x2d9   : > { %v369_v16 = vmul.f32 1.442695, %v368_v15 }
 0x2db   : > { %659 = vpow2.f32 %v369_v16 }
 0x2e8   : > { %v660_v17 = vpop.eup %659 }
 0x2e9   : > { %v371_v18 = vsel %vm364_vm2, %v660_v17, 0.0 }
 0x2ea   : > { %372 = vadd.xlane.f32.xlu1 %v371_v18 }
 0x2fb   : > { %376 = vrot.lane.b32.xlu1 %v284_v8, %s794_s22 }
 0x373   : > { %v373_v19 = vpop.xlane.xlu1 %372 }
 0x374   : > { %661 = vrcp.f32 %v373_v19 }
 0x377   : > { %v377_v20 = vpop.permute.xlu1 %376 }
 0x378   : > { %592 = vmatpush3.msra.mxu1 %v377_v20 }
 0x381   : > { %v662_v21 = vpop.eup %661 }
 0x382   : > { %v375_v22 = vmul.f32 %v662_v21, %v660_v17 }
 0x384   : > { %594 = vmatmul.mubr.msk.f32.vlgmr.msra.gmra.mxu1 %vm364_vm2, %v375_v22 }
 0x444   : > { %v448_v23 = vpop.f32.mrf.mxu1 }
 0x445   : > { %452 = vst.msk [vmem:[%s200_s25] sm:$0xff] %vm213_vm1, %v448_v23 }
 0x446   : > { %v595_v24 = vpop.f32.mrf.mxu1 }
 0x447   : > { %730 = shalt.err (!%p727_p0)
}
 0x448   : > { %s731_s21 = scalar_lea.hbm %s955_s4, 128  ;;  %s735_s27 = scalar_lea.hbm %s1002_s3, 256 }
 0x449   : > { %p732_p5 = scmp.ne.s32.totalorder %s955_s4, %s731_s21  ;;  %p736_p1 = scmp.lt.s32.totalorder %s955_s4, %s1002_s3 }
 0x44a   : > { %p737_p4 = scmp.lt.s32.totalorder %s735_s27, %s731_s21 }
 0x44b   : > { %p733_p9 = pnand %p732_p5, %p1018_p3 }
 0x44c   : > { %p738_p6 = por %p737_p4, %p736_p1 }
 0x44d   : > { %p734_p12 = pneg %p733_p9 }
 0x44f   : > { %p739_p8 = pnand %p738_p6, %p734_p12 }
 0x451   : > { %742 = shalt.err (!%p739_p8)
}
 0x452   : > { %602 = dma.vmem_to_hbm [thread:$0]  (%p1018_p3), %s957_s28, 128, %s955_s4, %s454_s8  }
 0x453 PF: > { %s479_s17 = sand.u32 1, %s773_s12   ;;  %p1019_p11 = scmp.ne.s32.totalorder %s1008_s19, 0 }
 0x454   : > { %p1020_p7 = scmp.ge.s32.totalorder %s785_s15, 2  ;;  %s480_s22 = scalar_lea.sflag [#allocation4], %s479_s17 }
 0x456   : > { %p613_p10 = pnand %p1020_p7, %p1019_p11 }
 0x458   : > { %p614_p2 = pneg %p613_p10 }
 0x45a   : > { %768 = dma.done.wait (%p614_p2), %s480_s22, 128  }
 0x45b   : > { %770 = vsyncadd (%p614_p2), %s480_s22, 4294967168  ;;  %p17_p13 = scmp.ge.s32.totalorder %s870_s24, 4   ;;  %s1021_s12 = smov %s777_s13 }
 0x45c   : > { %s1022_s13 = smov %s781_s14  ;;  %s1023_s14 = smov %s887_s5 }
 0x45d   : > { %s1024_s15 = smov %s870_s24  ;;  %19 = sbr.rel (!%p17_p13) target bundleno = 6 (0x6), region = 81 }
 0x462   :  { %485 = vsyncpa [#allocation3], 1 }
 0x463   :  { %487 = vsyncpa [#allocation3 + $0x1], 1 }
 0x464   :  { %488 = vsyncpa [#allocation6], 1 }
 0x465   :  { %489 = vsyncpa [#allocation4], 1 }
 0x466   :  { %491 = vsyncpa [#allocation4 + $0x1], 1 }

</bundles_post_ra>
